<compile_context>
chip_gen: v7x
topology: tpu7x:2x2x1
jax: 0.10.0
libtpu: 0.0.40
codegen_flags: <defaults>
</compile_context>

<pallas_src>
import jax
import jax.numpy as jnp
from jax.experimental import pallas as pl
from jax.experimental.pallas import tpu as pltpu

_LANE = 512                 # lane-dense last dim (multiple of 128)
_MAX_TILE_ROWS = 1024       # (1024, 512) f32 = 2 MiB per input per grid step
_NUM_CORE_SPLITS = 2        # leading "parallel" axis -> both v7x TensorCores
_SMALL_FAST_PATH = 1 << 15  # below this element count, plain jnp (XLA fuses)


def _round_up(x, m):
    return ((x + m - 1) // m) * m


def _huber_mean_ref(predictions, targets, delta=1.0):
    """Pure-jnp reference / small-input fast path (matches the torch module)."""
    err = predictions.astype(jnp.float32) - targets.astype(jnp.float32)
    abs_err = jnp.abs(err)
    quad = 0.5 * err * err
    lin = delta * abs_err - 0.5 * delta * delta
    return jnp.mean(jnp.where(abs_err <= delta, quad, lin))


def _huber_kernel(scalars_ref, pred_ref, targ_ref, out_ref):
    """Grid = (core_split, tile). out_ref is this split's resident (8, LANE)
    accumulator slab; the wrapper does the final reduce + mean scale."""
    t = pl.program_id(1)

    @pl.when(t == 0)
    def _init():
        out_ref[...] = jnp.zeros_like(out_ref)

    delta = scalars_ref[0]                      # runtime SMEM scalar
    err = pred_ref[...] - targ_ref[...]
    abs_err = jnp.abs(err)
    # Clamped Huber identity: c = min(|e|, delta); loss = c * (|e| - c/2)
    # == 0.5*e^2 for |e| <= delta, delta*|e| - 0.5*delta^2 otherwise.
    c = jnp.minimum(abs_err, delta)
    loss = c * (abs_err - 0.5 * c)              # (tile_rows, LANE)

    # Cross-vreg partial reduction only (pure VPU adds; no XLU cross-lane
    # work, no masked narrow stores).  tile_rows is a multiple of 8.
    rows, lanes = loss.shape
    out_ref[...] += jnp.sum(loss.reshape(rows // 8, 8, lanes), axis=0)


def huber_loss(predictions, targets, delta=1.0, *,
               min_pallas_elements=_SMALL_FAST_PATH):
    predictions = jnp.asarray(predictions)
    targets = jnp.asarray(targets)
    assert predictions.shape == targets.shape
    count = predictions.size
    assert count > 0

    if count < min_pallas_elements:
        # Tiny inputs (e.g. module-native (batch, 3)): a fused XLA
        # elementwise+reduce beats a pallas_call's fixed overhead.
        return _huber_mean_ref(predictions, targets, delta)

    p = predictions.reshape(-1).astype(jnp.float32)
    t = targets.reshape(-1).astype(jnp.float32)

    # Lane-dense tiling: rows of _LANE elements, tiles of tile_rows rows,
    # an integer number of tiles per core split.
    rows_needed = pl.cdiv(count, _LANE)
    tiles_per_core = pl.cdiv(rows_needed, _NUM_CORE_SPLITS * _MAX_TILE_ROWS)
    tile_rows = min(
        _MAX_TILE_ROWS,
        _round_up(pl.cdiv(rows_needed, _NUM_CORE_SPLITS * tiles_per_core), 8))
    padded_rows = _NUM_CORE_SPLITS * tiles_per_core * tile_rows
    padded = padded_rows * _LANE

    # Zero padding contributes exactly zero loss (err == 0), so no in-kernel
    # masking is needed; waste is at most a few tile-rows worth of zeros.
    if padded != count:
        p = jnp.pad(p, (0, padded - count))
        t = jnp.pad(t, (0, padded - count))
    p2 = p.reshape(padded_rows, _LANE)
    t2 = t.reshape(padded_rows, _LANE)

    # Runtime scalar in SMEM -> changing delta does not trigger a recompile.
    scalars = jnp.array([float(delta)], dtype=jnp.float32)

    data_spec = pl.BlockSpec(
        (tile_rows, _LANE),
        lambda c, tt: (c * tiles_per_core + tt, 0))

    partials = pl.pallas_call(
        _huber_kernel,
        out_shape=jax.ShapeDtypeStruct((_NUM_CORE_SPLITS * 8, _LANE),
                                       jnp.float32),
        grid=(_NUM_CORE_SPLITS, tiles_per_core),
        in_specs=[
            pl.BlockSpec(memory_space=pltpu.MemorySpace.SMEM),   # scalars
            data_spec,                                           # predictions
            data_spec,                                           # targets
        ],
        # One (8, LANE) accumulator slab per core split -> no shared
        # accumulator race when the leading axis is sharded across v7x's TCs.
        out_specs=pl.BlockSpec((8, _LANE), lambda c, tt: (c, 0)),
        compiler_params=pltpu.CompilerParams(
            dimension_semantics=("parallel", "arbitrary")),
    )(scalars, p2, t2)

    # Tiny final reduce + mean scale (fused by XLA).
    return jnp.sum(partials) * (1.0 / float(count))


if __name__ == "__main__":
    key = jax.random.PRNGKey(0)
    k1, k2, k3, k4 = jax.random.split(key, 4)

    # Module-native small shape: (batch, 3) lower/mean/upper bounds.
    batch = 8
    preds = jax.random.normal(k1, (batch, 3), jnp.float32) * 2.0
    targs = jax.random.normal(k2, (batch, 3), jnp.float32) * 2.0
    ref_small = _huber_mean_ref(preds, targs, delta=1.0)

    # 1) Default path: tiny input takes the fused-jnp fast path.
    loss_small = huber_loss(preds, targs, delta=1.0)
    # 2) Force the Pallas kernel even at the tiny module-native shape.
    loss_small_pl = huber_loss(preds, targs, delta=1.0, min_pallas_elements=0)
    jax.block_until_ready((loss_small, loss_small_pl))
    assert jnp.allclose(loss_small, ref_small, atol=1e-6, rtol=1e-5), (
        loss_small, ref_small)
    assert jnp.allclose(loss_small_pl, ref_small, atol=1e-6, rtol=1e-5), (
        loss_small_pl, ref_small)

    # 3) Large ragged batch: exercises the gridded, multi-tile, dual-split
    #    Pallas path (grid (2, 3) with zero-padded last tile).
    big_b = 700_001
    preds_big = jax.random.normal(k3, (big_b, 3), jnp.float32) * 2.0
    targs_big = jax.random.normal(k4, (big_b, 3), jnp.float32) * 2.0
    loss_big = huber_loss(preds_big, targs_big, delta=0.75)
    jax.block_until_ready(loss_big)
    ref_big = _huber_mean_ref(preds_big, targs_big, delta=0.75)
    assert jnp.allclose(loss_big, ref_big, atol=1e-6, rtol=1e-4), (
        loss_big, ref_big)

    print("KERNEL_OK")
</pallas_src>

<mosaic_0001>
module attributes {stable_mosaic.version = 11 : i64} {
  func.func @_huber_kernel(%arg0: i32, %arg1: i32, %arg2: memref<1xf32, #tpu.memory_space<smem>>, %arg3: memref<8x512xf32, #tpu.memory_space<vmem>>, %arg4: memref<8x512xf32, #tpu.memory_space<vmem>>, %arg5: memref<8x512xf32, #tpu.memory_space<vmem>>) attributes {dimension_semantics = [#tpu.dimension_semantics<parallel>, #tpu.dimension_semantics<arbitrary>], iteration_bounds = array<i64: 2, 1>, scalar_prefetch = 0 : i64, scratch_operands = 0 : i64, tpu.core_type = #tpu.core_type<tc>, window_params = [{transform_indices = @transform_0, window_bounds = array<i64: 1>}, {transform_indices = @transform_1, window_bounds = array<i64: 8, 512>}, {transform_indices = @transform_2, window_bounds = array<i64: 8, 512>}, {transform_indices = @transform_3, window_bounds = array<i64: 8, 512>}]} {
    %c0_i32 = arith.constant 0 : i32
    %0 = arith.cmpi eq, %arg1, %c0_i32 : i32
    %1 = arith.extui %0 : i1 to i32
    %c0_i32_0 = arith.constant 0 : i32
    %2 = arith.cmpi ne, %1, %c0_i32_0 : i32
    scf.if %2 {
      %cst_10 = arith.constant 0.000000e+00 : f32
      %19 = vector.broadcast %cst_10 : f32 to vector<8x512xf32>
      %c0_11 = arith.constant 0 : index
      %c0_12 = arith.constant 0 : index
      %20 = vector.load %arg5[%c0_11, %c0_12] : memref<8x512xf32, #tpu.memory_space<vmem>>, vector<8x512xf32>
      tpu.vector_store %arg5[%c0_11, %c0_12], %19 {strides = array<i32>} : memref<8x512xf32, #tpu.memory_space<vmem>>, vector<8x512xf32>,
    } else {
    }
    %c0 = arith.constant 0 : index
    %3 = memref.load %arg2[%c0] : memref<1xf32, #tpu.memory_space<smem>>
    %c0_1 = arith.constant 0 : index
    %c0_2 = arith.constant 0 : index
    %4 = vector.load %arg3[%c0_1, %c0_2] : memref<8x512xf32, #tpu.memory_space<vmem>>, vector<8x512xf32>
    %c0_3 = arith.constant 0 : index
    %c0_4 = arith.constant 0 : index
    %5 = vector.load %arg4[%c0_3, %c0_4] : memref<8x512xf32, #tpu.memory_space<vmem>>, vector<8x512xf32>
    %6 = arith.subf %4, %5 : vector<8x512xf32>
    %7 = math.absf %6 : vector<8x512xf32>
    %8 = vector.broadcast %3 : f32 to vector<8x512xf32>
    %9 = arith.minimumf %7, %8 : vector<8x512xf32>
    %cst = arith.constant 5.000000e-01 : f32
    %10 = vector.broadcast %cst : f32 to vector<8x512xf32>
    %11 = arith.mulf %10, %9 : vector<8x512xf32>
    %12 = arith.subf %7, %11 : vector<8x512xf32>
    %13 = arith.mulf %9, %12 : vector<8x512xf32>
    %c0_5 = arith.constant 0 : index
    %c0_6 = arith.constant 0 : index
    %14 = vector.load %arg5[%c0_5, %c0_6] : memref<8x512xf32, #tpu.memory_space<vmem>>, vector<8x512xf32>
    %15 = vector.shape_cast %13 : vector<8x512xf32> to vector<1x8x512xf32>
    %cst_7 = arith.constant dense<0.000000e+00> : vector<8x512xf32>
    %16 = vector.multi_reduction <add>, %15, %cst_7 [0] : vector<1x8x512xf32> to vector<8x512xf32>
    %17 = arith.addf %14, %16 : vector<8x512xf32>
    %c0_8 = arith.constant 0 : index
    %c0_9 = arith.constant 0 : index
    %18 = vector.load %arg5[%c0_8, %c0_9] : memref<8x512xf32, #tpu.memory_space<vmem>>, vector<8x512xf32>
    tpu.vector_store %arg5[%c0_8, %c0_9], %17 {strides = array<i32>} : memref<8x512xf32, #tpu.memory_space<vmem>>, vector<8x512xf32>,
    return
  }
  func.func @transform_0(%arg0: i32, %arg1: i32) -> i32 {
    %c0_i32 = arith.constant 0 : i32
    %c0_i32_0 = arith.constant 0 : i32
    return %c0_i32 : i32
  }
  func.func @transform_1(%arg0: i32, %arg1: i32) -> (i32, i32) {
    %c1_i32 = arith.constant 1 : i32
    %0 = arith.muli %arg0, %c1_i32 : i32
    %1 = arith.addi %0, %arg1 : i32
    %c0_i32 = arith.constant 0 : i32
    %c0_i32_0 = arith.constant 0 : i32
    return %1, %c0_i32 : i32, i32
  }
  func.func @transform_2(%arg0: i32, %arg1: i32) -> (i32, i32) {
    %c1_i32 = arith.constant 1 : i32
    %0 = arith.muli %arg0, %c1_i32 : i32
    %1 = arith.addi %0, %arg1 : i32
    %c0_i32 = arith.constant 0 : i32
    %c0_i32_0 = arith.constant 0 : i32
    return %1, %c0_i32 : i32, i32
  }
  func.func @transform_3(%arg0: i32, %arg1: i32) -> (i32, i32) {
    %c0_i32 = arith.constant 0 : i32
    %c0_i32_0 = arith.constant 0 : i32
    return %arg0, %c0_i32 : i32, i32
  }
}

</mosaic_0001>

<bundles_post_ra>
// kernel: tpu_custom_call.1
= control target key start
LH: loop header
LB: loop body
LE: loop exit
PB: predicated region body
PF: predicated region fallthrough
CT: control target
= control target key end

     0   :  { %s911_s0 = inlined_call_operand.<no memory space> [shape: f32[1], index: 0, kind: input, shape index: {}]   ;;  %s912_s1 = inlined_call_operand.hbm [shape: f32[16,512], index: 1, kind: input, shape index: {}]   ;;  %s913_s2 = inlined_call_operand.hbm [shape: f32[16,512], index: 2, kind: input, shape index: {}]   ;;  %s914_s3 = inlined_call_operand.hbm [shape: f32[16,512], index: 3, kind: output, shape index: {}]  }
   0x1   :  { %8 = sst [smem:[#allocation2]] %s911_s0 }
   0x2   :  { %9 = vsyncpa [#allocation4], 0 }
   0x3   :  { %11 = vsyncpa [#allocation4 + $0x1], 0 }
   0x4   :  { %12 = vsyncpa [#allocation7], 0 }
   0x5   :  { %14 = vsyncpa [#allocation7 + $0x1], 0 }
   0x6   :  { %15 = vsyncpa [#allocation5], 0 }
   0x7   :  { %17 = vsyncpa [#allocation5 + $0x1], 0  ;;  %s686_s14 = smov 0   ;;  %s688_s15 = smov 0  }
   0x8   :  { %s690_s16 = smov 0   ;;  %s692_s17 = smov 0  }
   0x9   :  { %s694_s18 = smov 0   ;;  %s696_s19 = smov 0  }
   0xa LB: > { %s422_s0 = sadd.s32 4294967295, %s658_s19   ;;  %s423_s20 = sadd.s32 4294967294, %s658_s19   ;;  %s658_s19 = sphi %s696_s19, %s23_s19   ;;  %s654_s18 = sphi %s694_s18, %s934_s18   ;;  %s650_s17 = sphi %s692_s17, %s933_s17   ;;  %s646_s16 = sphi %s690_s16, %s932_s16   ;;  %s642_s15 = sphi %s688_s15, %s931_s15   ;;  %s638_s14 = sphi %s686_s14, %s930_s14  }
   0xb   : > { %s35_s21 = sadd.s32 1, %s654_s18  ;;  %s65_s22 = sadd.s32 1, %s646_s16 }
   0xc   : > { %p37_p0 = scmp.ge.s32.totalorder %s35_s21, 2  ;;  %p72_p1 = scmp.ne.s32.totalorder %s646_s16, %s642_s15 }
   0xd   : > { %p73_p2 = scmp.eq.s32.totalorder %s658_s19, 0  ;;  %p78_p3 = scmp.ne.s32.totalorder %s642_s15, %s638_s14 }
   0xe   : > { %s936_s21 = smov (%p37_p0, %s35_s21), 0  ;;  %p79_p5 = scmp.eq.s32.totalorder %s422_s0, 0 }
   0xf   : > { %p727_p4 = por %p73_p2, %p72_p1  ;;  %s62_s24 = ssub.s32 %s654_s18, %s936_s21 }
  0x10   : > { %p130_p6 = scmp.eq.s32.totalorder %s422_s0, 1  ;;  %p63_p7 = scmp.eq.s32.totalorder %s62_s24, 0 }
  0x11   : > { %p733_p8 = por %p79_p5, %p78_p3  ;;  %p136_p10 = scmp.eq.s32.totalorder %s423_s20, 1 }
  0x12   : > { %p737_p9 = por %p130_p6, %p72_p1  ;;  %p461_p13 = scmp.lt.s32.totalorder %s658_s19, 2 }
  0x13   : > { %s918_s25 = scalar_select %p733_p8, 1, 0 }
  0x14   : > { %s919_s26 = scalar_select %p737_p9, 1, 0 }
  0x15   : > { %s742_s27 = scalar_select %p63_p7, %s646_s16, %s65_s22  }
  0x16   : > { %p744_p11 = por %p136_p10, %p78_p3  ;;  %s751_s29 = sand.u32 1, %s646_s16  }
  0x17   : > { %s426_s30 = sshll.u32 %s751_s29, 5  ;;  %s441_s4 = sshll.u32 %s654_s18, 9 }
  0x18   : > { %s920_s28 = scalar_select %p744_p11, 1, 0 }
  0x19   : > { %s760_s7 = scalar_lea.hbm %s912_s1, %s441_s4  ;;  %s163_s8 = scalar_lea.vmem [#allocation3], %s426_s30 }
  0x1a   : > { %s172_s9 = sshll.u32 %s163_s8, 4  ;;  %p768_p0 = pnand %p461_p13, %p727_p4  ;;  %s764_s9 = int_to_ptr.vmem [resolvable:$true] %s172_s9 }
  0x1b   : > { %s160_s11 = scalar_lea.sflag [#allocation4], %s751_s29  ;;  %s512_s12 = scalar_lea.hbm %s760_s7, 512 }
  0x1c   : > { %p513_p3 = scmp.ne.s32.totalorder %s760_s7, %s512_s12  ;;  %p514_p5 = pneg %p768_p0 }
  0x1d   : > { %s517_s20 = scalar_lea.hbm %s912_s1, 1024  ;;  %p518_p4 = scmp.lt.u32.totalorder %s760_s7, %s912_s1 }
  0x1e   : > { %p515_p6 = pnand %p514_p5, %p513_p3  ;;  %p519_p10 = scmp.lt.u32.totalorder %s517_s20, %s512_s12 }
  0x1f   : > { %p521_p12 = scmp.lt.u32.totalorder %s512_s12, %s760_s7 }
  0x20   : > { %p516_p7 = pneg %p515_p6  ;;  %p520_p13 = por %p519_p10, %p518_p4 }
  0x22   : > { %p522_p1 = por %p521_p12, %p520_p13 }
  0x24   : > { %p523_p2 = pnand %p522_p1, %p516_p7 }
  0x26   : > { %526 = shalt.err (!%p523_p2)
}
  0x27   : > { %s527_s24 = scalar_lea.vmem %s764_s9, 512  ;;  %s660_s5 = smov [#allocation3]  }
  0x28   : > { %p528_p3 = scmp.ne.s32.totalorder %s764_s9, %s527_s24  ;;  %s532_s6 = sshll.u32 %s660_s5, 4  ;;  %s533_s6 = int_to_ptr.vmem [resolvable:$false] %s532_s6 }
  0x29   : > { %s534_s8 = scalar_lea.vmem %s533_s6, 1024  ;;  %p535_p9 = scmp.lt.s32.totalorder %s764_s9, %s533_s6 }
  0x2a   : > { %p530_p6 = pnand %p528_p3, %p514_p5  ;;  %p536_p4 = scmp.lt.s32.totalorder %s534_s8, %s527_s24 }
  0x2c   : > { %p531_p11 = pneg %p530_p6  ;;  %p537_p10 = por %p536_p4, %p535_p9 }
  0x2e   : > { %p538_p12 = pnand %p537_p10, %p531_p11 }
  0x30   : > { %541 = shalt.err (!%p538_p12)
}
  0x31   : > { %453 = dma.hbm_to_vmem [thread:$0]  (!%p768_p0), %s760_s7, 512, %s764_s9, %s160_s11  }
  0x32   : > { %p922_p1 = scmp.lt.s32.totalorder %s658_s19, 3  ;;  %p923_p2 = scmp.ge.s32.totalorder %s658_s19, 1 }
  0x33   : > { %s813_s20 = scalar_lea.hbm %s913_s2, %s441_s4  ;;  %s183_s22 = scalar_lea.vmem [#allocation6], %s426_s30 }
  0x34   : > { %p804_p7 = pnand %p923_p2, %p922_p1  ;;  %s192_s23 = sshll.u32 %s183_s22, 4  ;;  %s193_s23 = int_to_ptr.vmem [resolvable:$true] %s192_s23 }
  0x35   : > { %s180_s7 = scalar_lea.sflag [#allocation7], %s751_s29  ;;  %s542_s9 = scalar_lea.hbm %s813_s20, 512 }
  0x36   : > { %s924_s12 = scalar_select %p804_p7, 1, 0 }
  0x37   : > { %p543_p9 = scmp.ne.s32.totalorder %s813_s20, %s542_s9  ;;  %s547_s4 = scalar_lea.hbm %s913_s2, 1024 }
  0x38   : > { %p548_p3 = scmp.lt.u32.totalorder %s813_s20, %s913_s2  ;;  %p549_p6 = scmp.lt.u32.totalorder %s547_s4, %s542_s9 }
  0x39   : > { %p545_p11 = pnand %p543_p9, %p514_p5  ;;  %p551_p10 = scmp.lt.u32.totalorder %s542_s9, %s813_s20 }
  0x3a   : > { %p550_p4 = por %p549_p6, %p548_p3 }
  0x3b   : > { %p546_p13 = pneg %p545_p11 }
  0x3c   : > { %p552_p12 = por %p551_p10, %p550_p4 }
  0x3e   : > { %p553_p1 = pnand %p552_p12, %p546_p13 }
  0x40   : > { %556 = shalt.err (!%p553_p1)
}
  0x41   : > { %s557_s29 = scalar_lea.vmem %s193_s23, 512  ;;  %s661_s30 = smov [#allocation6]  }
  0x42   : > { %p558_p2 = scmp.ne.s32.totalorder %s193_s23, %s557_s29  ;;  %s562_s8 = sshll.u32 %s661_s30, 4  ;;  %s563_s8 = int_to_ptr.vmem [resolvable:$false] %s562_s8 }
  0x43   : > { %s564_s13 = scalar_lea.vmem %s563_s8, 1024  ;;  %p565_p8 = scmp.lt.s32.totalorder %s193_s23, %s563_s8 }
  0x44   : > { %p560_p9 = pnand %p558_p2, %p514_p5  ;;  %p566_p7 = scmp.lt.s32.totalorder %s564_s13, %s557_s29 }
  0x46   : > { %p561_p11 = pneg %p560_p9  ;;  %p567_p3 = por %p566_p7, %p565_p8 }
  0x48   : > { %p568_p6 = pnand %p567_p3, %p561_p11 }
  0x4a   : > { %571 = shalt.err (!%p568_p6)
}
  0x4b   : > { %456 = dma.hbm_to_vmem [thread:$0]  (!%p768_p0), %s813_s20, 512, %s193_s23, %s180_s7  }
  0x4c   : > { %p925_p13 = scmp.ne.s32.totalorder %s924_s12, 0 }
  0x4d   : > { %s840_s0 = sand.u32 (!%p925_p13), 1, %s642_s15   ;;  %p926_p8 = scmp.ne.s32.totalorder (!%p925_p13), %s918_s25, 0 }
  0x4e   : > { %201 = sbr.rel (%p925_p13) target bundleno = 118 (0x76), region = 32  ;;  %s843_s22 = sshll.u32 (!%p925_p13), %s840_s0, 5 }
  0x4f   : > { %s204_s9 = scalar_lea.sflag (!%p925_p13), [#allocation4], %s840_s0  ;;  %s207_s11 = scalar_lea.vmem (!%p925_p13), [#allocation3], %s843_s22 }
  0x55   : > { %625 = dma.done.wait (%p926_p8), %s204_s9, 512  }
  0x56   : > { %627 = vsyncadd (%p926_p8), %s204_s9, 4294966784  ;;  %s213_s10 = scalar_lea.sflag [#allocation7], %s840_s0  ;;  %s216_s12 = scalar_lea.vmem [#allocation6], %s843_s22 }
  0x57   : > { %629 = dma.done.wait (%p926_p8), %s213_s10, 512  }
  0x58   : > { %631 = vsyncadd (%p926_p8), %s213_s10, 4294966784  ;;  %s254_s20 = sld [smem:[#allocation2]]  ;;  %v255_v0 = vld [vmem:[%s207_s11] sm:$0xff]  ;;  %v256_v2 = vld [vmem:[%s207_s11 + $0x8] sm:$0xff]  ;;  %s443_s25 = sshll.u32 %s650_s17, 9 }
  0x59   : > { %v259_v1 = vld [vmem:[%s216_s12] sm:$0xff]  ;;  %v260_v4 = vld [vmem:[%s216_s12 + $0x8] sm:$0xff]  ;;  %v257_v5 = vld [vmem:[%s207_s11 + $0x10] sm:$0xff]  ;;  %s243_s23 = scalar_lea.vmem [#allocation8], %s843_s22  ;;  %s862_s5 = scalar_lea.hbm %s914_s3, %s443_s25 }
  0x5a   : > { %v263_v3 = vsub.f32 %v255_v0, %v259_v1  ;;  %v261_v6 = vld [vmem:[%s216_s12 + $0x10] sm:$0xff]  ;;  %v264_v8 = vsub.f32 %v256_v2, %v260_v4  ;;  %v258_v10 = vld [vmem:[%s207_s11 + $0x18] sm:$0xff]  ;;  %s319_s7 = sshll.u32 %s243_s23, 4  ;;  %s305_s6 = scalar_lea.sflag [#allocation5], %s840_s0  ;;  %s864_s7 = int_to_ptr.vmem [resolvable:$true] %s319_s7 }
  0x5b   : > { %v265_v9 = vsub.f32 %v257_v5, %v261_v6  ;;  %v262_v11 = vld [vmem:[%s216_s12 + $0x18] sm:$0xff]  ;;  %s572_s29 = scalar_lea.vmem %s864_s7, 512  ;;  %p927_p5 = scmp.ne.s32.totalorder %s919_s26, 0 }
  0x5c   : > { %v267_v12 = vand.u32 2147483647, %v263_v3  ;;  %v266_v13 = vsub.f32 %v258_v10, %v262_v11  ;;  %v268_v14 = vand.u32 2147483647, %v264_v8  ;;  %p573_p0 = scmp.ne.s32.totalorder %s864_s7, %s572_s29  ;;  %s662_s17 = smov [#allocation8]  }
  0x5d   : > { %v269_v15 = vand.u32 2147483647, %v265_v9  ;;  %s576_s30 = sshll.u32 %s662_s17, 4  ;;  %s577_s30 = int_to_ptr.vmem [resolvable:$false] %s576_s30 }
  0x5e   : > { %v271_v7 = vstv %s254_s20  ;;  %v270_v17 = vand.u32 2147483647, %v266_v13  ;;  %p574_p7 = pnand %p573_p0, %p927_p5  ;;  %s578_s8 = scalar_lea.vmem %s577_s30, 1024 }
  0x5f   : > { %v272_v16 = vmin.f32 %v267_v12, %v271_v7  ;;  %v273_v18 = vmin.f32 %v268_v14, %v271_v7  ;;  %v274_v19 = vmin.f32 %v269_v15, %v271_v7  ;;  %p579_p10 = scmp.lt.s32.totalorder %s864_s7, %s577_s30  ;;  %p580_p12 = scmp.lt.s32.totalorder %s578_s8, %s572_s29 }
  0x60   : > { %v275_v21 = vmin.f32 %v270_v17, %v271_v7  ;;  %p575_p4 = pneg %p574_p7 }
  0x61   : > { %v276_v20 = vmul.f32 0.5, %v272_v16  ;;  %v277_v22 = vmul.f32 0.5, %v273_v18  ;;  %v278_v23 = vmul.f32 0.5, %v274_v19  ;;  %p581_p1 = por %p580_p12, %p579_p10 }
  0x62   : > { %v279_v25 = vmul.f32 0.5, %v275_v21 }
  0x63   : > { %v280_v24 = vsub.f32 %v267_v12, %v276_v20  ;;  %v281_v26 = vsub.f32 %v268_v14, %v277_v22  ;;  %v282_v27 = vsub.f32 %v269_v15, %v278_v23  ;;  %p582_p2 = pnand %p581_p1, %p575_p4 }
  0x64   : > { %v283_v29 = vsub.f32 %v270_v17, %v279_v25 }
  0x65   : > { %v284_v28 = vmul.f32 %v280_v24, %v272_v16  ;;  %v285_v30 = vmul.f32 %v281_v26, %v273_v18  ;;  %v286_v31 = vmul.f32 %v282_v27, %v274_v19 }
  0x66   : > { %v287_v32 = vmul.f32 %v283_v29, %v275_v21 }
  0x67   : > { %300 = vst [vmem:[%s243_s23] sm:$0xff] %v284_v28  ;;  %301 = vst [vmem:[%s243_s23 + $0x8] sm:$0xff] %v285_v30 }
  0x68   : > { %302 = vst [vmem:[%s243_s23 + $0x10] sm:$0xff] %v286_v31  ;;  %303 = vst [vmem:[%s243_s23 + $0x18] sm:$0xff] %v287_v32 }
  0x69   : > { %585 = shalt.err (!%p582_p2)
}
  0x6a   : > { %s586_s13 = scalar_lea.hbm %s862_s5, 512  ;;  %s590_s9 = scalar_lea.hbm %s914_s3, 1024 }
  0x6b   : > { %p587_p9 = scmp.ne.s32.totalorder %s862_s5, %s586_s13  ;;  %p591_p6 = scmp.lt.u32.totalorder %s862_s5, %s914_s3 }
  0x6c   : > { %p592_p13 = scmp.lt.u32.totalorder %s590_s9, %s586_s13  ;;  %p594_p0 = scmp.lt.u32.totalorder %s586_s13, %s862_s5 }
  0x6d   : > { %p588_p11 = pnand %p587_p9, %p927_p5 }
  0x6e   : > { %p593_p8 = por %p592_p13, %p591_p6 }
  0x6f   : > { %p589_p3 = pneg %p588_p11 }
  0x70   : > { %p595_p7 = por %p594_p0, %p593_p8 }
  0x72   : > { %p596_p4 = pnand %p595_p7, %p589_p3 }
  0x74   : > { %599 = shalt.err (!%p596_p4)
}
  0x75   : > { %448 = dma.vmem_to_hbm [thread:$0]  (%p927_p5), %s864_s7, 512, %s862_s5, %s305_s6  }
  0x76 PF: > { %s331_s12 = sand.u32 1, %s638_s14   ;;  %p928_p10 = scmp.ne.s32.totalorder %s920_s28, 0 }
  0x77   : > { %p929_p12 = scmp.ge.s32.totalorder %s658_s19, 2  ;;  %s332_s20 = scalar_lea.sflag [#allocation5], %s331_s12 }
  0x79   : > { %p458_p1 = pnand %p929_p12, %p928_p10 }
  0x7b   : > { %633 = dma.done.wait (!%p458_p1), %s332_s20, 512  }
  0x7c   : > { %635 = vsyncadd (!%p458_p1), %s332_s20, 4294966784  ;;  %s23_s19 = sadd.s32 1, %s658_s19   ;;  %s930_s14 = smov %s642_s15 }
  0x7d   : > { %p20_p2 = scmp.ge.s32.totalorder %s23_s19, 4   ;;  %s931_s15 = smov %s646_s16 }
  0x7e   : > { %s932_s16 = smov %s742_s27  ;;  %s933_s17 = smov %s654_s18 }
  0x7f   : > { %s934_s18 = smov %s936_s21  ;;  %22 = sbr.rel (!%p20_p2) target bundleno = 10 (0xa), region = 94 }
  0x86   :  { %337 = vsyncpa [#allocation4], 1 }
  0x87   :  { %339 = vsyncpa [#allocation4 + $0x1], 1 }
  0x88   :  { %340 = vsyncpa [#allocation7], 1 }
  0x89   :  { %342 = vsyncpa [#allocation7 + $0x1], 1 }
  0x8a   :  { %343 = vsyncpa [#allocation5], 1 }
  0x8b   :  { %345 = vsyncpa [#allocation5 + $0x1], 1 }

</bundles_post_ra>
